<compile_context>
chip_gen: v7x
topology: tpu7x:2x2x1
jax: 0.10.0
libtpu: 0.0.40
codegen_flags: <defaults>
</compile_context>

<pallas_src>
import functools

import jax
import jax.numpy as jnp
from jax.experimental import pallas as pl
from jax.experimental.pallas import tpu as pltpu


LANE = 128  # lane width: pad all feature dims to multiples of this


def _round_up(x, mult):
    return (x + mult - 1) // mult * mult


# ----------------------------------------------------------------------------
# Mask construction (mirrors MaskedLinear_border / MaskedLinear_nonsquare)
# ----------------------------------------------------------------------------
def _border_mask(n, m, in_ch, out_ch, exclusive):
    mm = jnp.ones((m, m), jnp.float32)
    core = (1.0 - jnp.triu(mm)) if exclusive else jnp.tril(mm)
    mask = jnp.concatenate([jnp.zeros((n - m, m), jnp.float32), core], axis=0)  # [n, m]
    mask = jnp.concatenate([jnp.ones((n, n - m), jnp.float32), mask], axis=1)   # [n, n]
    return jnp.tile(mask, (out_ch, in_ch))                                      # [out_ch*n, in_ch*n]


def _nonsquare_mask(n, m, in_ch, out_ch):
    core = jnp.tril(jnp.ones((m, m), jnp.float32))
    mask = jnp.concatenate([jnp.ones((m, n - m), jnp.float32), core], axis=1)   # [m, n]
    return jnp.tile(mask, (out_ch, in_ch))                                      # [out_ch*m, in_ch*n]


# ----------------------------------------------------------------------------
# Deterministic synthetic parameter init (same shapes as the PyTorch __init__)
# ----------------------------------------------------------------------------
def init_params(key, n_out, n_in, net_depth, net_width):
    m = n_out
    n = m + n_in
    params = []  # per layer: dict(alpha or None, w [out, in], b [out])
    keys = iter(jax.random.split(key, 4 * net_depth + 4))

    def masked_weight(k, out_f, in_f, mask):
        w = jax.random.normal(k, (out_f, in_f), jnp.float32) * 0.1
        w = w * mask
        w = w * jnp.sqrt(mask.size / jnp.sum(mask))
        return mask * w  # forward uses mask * weight

    # layer 0: MaskedLinear_border(1, W or 1, exclusive=True)
    out_ch0 = 1 if net_depth == 1 else net_width
    mask0 = _border_mask(n, m, 1, out_ch0, exclusive=True)
    params.append(dict(
        alpha=None,
        w=masked_weight(next(keys), out_ch0 * n, n, mask0),
        b=jax.random.normal(next(keys), (out_ch0 * n,), jnp.float32) * 0.01,
    ))

    # middle blocks: PReLU + MaskedLinear_border(W, W, exclusive=False)
    for _ in range(net_depth - 2):
        mask = _border_mask(n, m, net_width, net_width, exclusive=False)
        params.append(dict(
            alpha=jnp.full((net_width * n,), 0.5, jnp.float32),
            w=masked_weight(next(keys), net_width * n, net_width * n, mask),
            b=jax.random.normal(next(keys), (net_width * n,), jnp.float32) * 0.01,
        ))

    # last block: PReLU + MaskedLinear_nonsquare(W, 1)
    if net_depth >= 2:
        mask = _nonsquare_mask(n, m, net_width, 1)
        params.append(dict(
            alpha=jnp.full((net_width * n,), 0.5, jnp.float32),
            w=masked_weight(next(keys), m, net_width * n, mask),
            b=jax.random.normal(next(keys), (m,), jnp.float32) * 0.01,
        ))

    return params, n, m


# ----------------------------------------------------------------------------
# One-time parameter preparation (hoisted out of the per-call forward):
# transpose to [in, out], zero-pad to lane-dense shapes, cast weights to bf16.
# ----------------------------------------------------------------------------
def prepare_params(params):
    flat = []        # kernel operand list: layer0 -> (w, b); layers 1.. -> (alpha, w, b)
    layer_dims = []  # (in_pad, out_pad) per layer (for specs / cost estimate)
    for li, p in enumerate(params):
        w = p["w"]                     # [out, in] fp32
        out_f, in_f = w.shape
        in_pad = _round_up(in_f, LANE)
        out_pad = _round_up(out_f, LANE)
        if li > 0:
            a = jnp.zeros((1, in_pad), jnp.float32).at[0, :in_f].set(p["alpha"])
            flat.append(a)                                           # PReLU slope, fp32
        w_t = jnp.zeros((in_pad, out_pad), jnp.float32).at[:in_f, :out_f].set(w.T)
        flat.append(w_t.astype(jnp.bfloat16))                        # MXU operand, bf16
        b = jnp.zeros((1, out_pad), jnp.float32).at[0, :out_f].set(p["b"])
        flat.append(b)                                               # bias, fp32
        layer_dims.append((in_pad, out_pad))
    # TODO(synk): for many wide layers, pack biases/alphas into one slab to avoid
    #             per-array (8,128) VMEM padding waste.
    return flat, layer_dims


# ----------------------------------------------------------------------------
# Pallas kernel: full masked-MLP forward (bf16 MXU matmuls, fp32 elementwise)
# ----------------------------------------------------------------------------
def _mlp_kernel(num_layers, x_ref, *refs):
    # refs layout: layer0 -> (w, b); layers 1.. -> (alpha, w, b); last ref = output
    out_ref = refs[-1]
    refs = refs[:-1]
    h = x_ref[...]                                        # [TB, n_pad] fp32
    idx = 0
    for li in range(num_layers):
        if li > 0:
            a = refs[idx][...]; idx += 1                  # [1, feat] fp32 PReLU slope
            h = jnp.where(h > 0, h, a * h)                # PReLU in fp32 (VPU)
        w = refs[idx][...]; idx += 1                      # [in_pad, out_pad] bf16 (resident)
        b = refs[idx][...]; idx += 1                      # [1, out_pad] fp32
        h = jnp.dot(h.astype(jnp.bfloat16), w,
                    preferred_element_type=jnp.float32) + b
    out_ref[...] = jax.nn.sigmoid(h)                      # fp32, lane-dense store


# ----------------------------------------------------------------------------
# Wrapper: batch-tiled pallas_call with resident weights
# ----------------------------------------------------------------------------
def autoregressive_internal_forward(x, border, flat_params, layer_dims, n, m):
    """x: [B, 1, m] spins, border: [B, n_in] -> returns x_hat [B, 1, m]."""
    B = x.shape[0]
    n_pad = layer_dims[0][0]
    m_pad = layer_dims[-1][1]

    xin = jnp.concatenate([border.reshape(B, -1), x.reshape(B, -1)], axis=1)  # [B, n]
    assert xin.shape[1] == n

    # Batch tile: >=8 sublanes (fp32), up to 128 MXU rows per step.
    TB = min(128, _round_up(max(B, 1), 8))
    B_pad = _round_up(B, TB)
    xin_pad = jnp.zeros((B_pad, n_pad), jnp.float32).at[:B, :n].set(xin)

    num_layers = len(layer_dims)
    kernel = functools.partial(_mlp_kernel, num_layers)

    # Batch-tiled activation specs; constant index_map keeps weights resident.
    in_specs = [pl.BlockSpec((TB, n_pad), lambda i: (i, 0))]
    for f in flat_params:
        in_specs.append(pl.BlockSpec(f.shape, lambda i: (0, 0)))
    out_spec = pl.BlockSpec((TB, m_pad), lambda i: (i, 0))

    # Explicit VMEM budget: double-buffered blocks + slack (well under v7x 64 MiB).
    block_bytes = TB * n_pad * 4 + TB * m_pad * 4
    block_bytes += sum(int(f.size) * f.dtype.itemsize for f in flat_params)
    vmem_limit = int(min(2 * block_bytes + (4 << 20), 60 << 20))

    flops = 2 * B_pad * sum(i * o for i, o in layer_dims)
    bytes_accessed = (xin_pad.size * 4 + B_pad * m_pad * 4
                      + sum(int(f.size) * f.dtype.itemsize for f in flat_params))
    transcendentals = B_pad * m_pad  # sigmoid

    out = pl.pallas_call(
        kernel,
        out_shape=jax.ShapeDtypeStruct((B_pad, m_pad), jnp.float32),
        grid=(B_pad // TB,),
        in_specs=in_specs,
        out_specs=out_spec,
        compiler_params=pltpu.CompilerParams(
            dimension_semantics=("parallel",),      # v7x: shard batch tiles across 2 TCs
            vmem_limit_bytes=vmem_limit),
        cost_estimate=pl.CostEstimate(
            flops=int(flops),
            transcendentals=int(transcendentals),
            bytes_accessed=int(bytes_accessed)),
    )(xin_pad, *flat_params)

    # TODO(synk): for very large hidden widths add a K grid axis ("arbitrary", last)
    #             with a fp32 VMEM accumulator, and use PrefetchScalarGridSpec to skip
    #             the zero blocks of the (block-)triangular masks.
    # TODO(synk): sample() (sequential per-site Bernoulli loop) should be fused into
    #             one kernel (pl.loop over the m steps with weights resident in VMEM)
    #             instead of m pallas_call launches; log_prob() is a driver-level
    #             reduction around this forward and is not part of the kernel.
    return out[:B, :m].reshape(B, 1, m)


# Pure-JAX reference (same bf16 weight / fp32 accumulation recipe) for correctness.
def reference_forward(x, border, params, n, m):
    B = x.shape[0]
    h = jnp.concatenate([border.reshape(B, -1), x.reshape(B, -1)], axis=1)
    for li, p in enumerate(params):
        if li > 0:
            a = p["alpha"][None, :]
            h = jnp.where(h > 0, h, a * h)
        h = jnp.dot(h.astype(jnp.bfloat16), p["w"].T.astype(jnp.bfloat16),
                    preferred_element_type=jnp.float32) + p["b"][None, :]
    return jax.nn.sigmoid(h).reshape(B, 1, m)


if __name__ == "__main__":
    key = jax.random.PRNGKey(0)
    k_x, k_b, k_p = jax.random.split(key, 3)

    # small shapes consistent with the module
    n_out, n_in, net_depth, net_width = 8, 8, 3, 4
    batch = 2

    params, n, m = init_params(k_p, n_out, n_in, net_depth, net_width)
    flat_params, layer_dims = prepare_params(params)   # one-time prep (not per forward)

    # ±1 spin configurations (same convention as sample()/log_prob())
    x = jax.random.bernoulli(k_x, 0.5, (batch, 1, n_out)).astype(jnp.float32) * 2 - 1
    border = jax.random.bernoulli(k_b, 0.5, (batch, n_in)).astype(jnp.float32) * 2 - 1

    out = autoregressive_internal_forward(x, border, flat_params, layer_dims, n, m)
    out = jax.block_until_ready(out)

    ref = reference_forward(x, border, params, n, m)
    assert out.shape == (batch, 1, m)
    err = float(jnp.max(jnp.abs(out - ref)))
    assert err < 1e-3, f"Pallas kernel mismatch vs JAX reference (max abs err {err})"

    print("KERNEL_OK")
</pallas_src>

<mosaic_0001>
module attributes {stable_mosaic.version = 11 : i64} {
  func.func @_mlp_kernel(%arg0: i32, %arg1: memref<8x128xf32, #tpu.memory_space<vmem>>, %arg2: memref<128x128xbf16, #tpu.memory_space<vmem>>, %arg3: memref<1x128xf32, #tpu.memory_space<vmem>>, %arg4: memref<1x128xf32, #tpu.memory_space<vmem>>, %arg5: memref<128x128xbf16, #tpu.memory_space<vmem>>, %arg6: memref<1x128xf32, #tpu.memory_space<vmem>>, %arg7: memref<1x128xf32, #tpu.memory_space<vmem>>, %arg8: memref<128x128xbf16, #tpu.memory_space<vmem>>, %arg9: memref<1x128xf32, #tpu.memory_space<vmem>>, %arg10: memref<8x128xf32, #tpu.memory_space<vmem>>) attributes {dimension_semantics = [#tpu.dimension_semantics<parallel>], iteration_bounds = array<i64: 1>, scalar_prefetch = 0 : i64, scratch_operands = 0 : i64, tpu.core_type = #tpu.core_type<tc>, window_params = [{transform_indices = @transform_0, window_bounds = array<i64: 8, 128>}, {pipeline_mode = #tpu.pipeline_mode<synchronous>, transform_indices = @transform_1, window_bounds = array<i64: 128, 128>}, {pipeline_mode = #tpu.pipeline_mode<synchronous>, transform_indices = @transform_2, window_bounds = array<i64: 1, 128>}, {pipeline_mode = #tpu.pipeline_mode<synchronous>, transform_indices = @transform_3, window_bounds = array<i64: 1, 128>}, {pipeline_mode = #tpu.pipeline_mode<synchronous>, transform_indices = @transform_4, window_bounds = array<i64: 128, 128>}, {pipeline_mode = #tpu.pipeline_mode<synchronous>, transform_indices = @transform_5, window_bounds = array<i64: 1, 128>}, {pipeline_mode = #tpu.pipeline_mode<synchronous>, transform_indices = @transform_6, window_bounds = array<i64: 1, 128>}, {pipeline_mode = #tpu.pipeline_mode<synchronous>, transform_indices = @transform_7, window_bounds = array<i64: 128, 128>}, {pipeline_mode = #tpu.pipeline_mode<synchronous>, transform_indices = @transform_8, window_bounds = array<i64: 1, 128>}, {transform_indices = @transform_9, window_bounds = array<i64: 8, 128>}]} {
    %c0 = arith.constant 0 : index
    %c0_0 = arith.constant 0 : index
    %0 = vector.load %arg1[%c0, %c0_0] : memref<8x128xf32, #tpu.memory_space<vmem>>, vector<8x128xf32>
    %c0_1 = arith.constant 0 : index
    %c0_2 = arith.constant 0 : index
    %1 = vector.load %arg2[%c0_1, %c0_2] : memref<128x128xbf16, #tpu.memory_space<vmem>>, vector<128x128xbf16>
    %c0_3 = arith.constant 0 : index
    %c0_4 = arith.constant 0 : index
    %2 = vector.load %arg3[%c0_3, %c0_4] : memref<1x128xf32, #tpu.memory_space<vmem>>, vector<1x128xf32>
    %3 = arith.truncf %0 : vector<8x128xf32> to vector<8x128xbf16>
    %cst = arith.constant dense<0.000000e+00> : vector<8x128xf32>
    %4 = tpu.matmul %3, %1, %cst {dimension_numbers = #tpu.dot_dimension_numbers<[1], [0], [0], [1], [0, 0, 1, 1], [], []>} : vector<8x128xbf16>, vector<128x128xbf16>, vector<8x128xf32> -> vector<8x128xf32>
    %5 = vector.broadcast %2 : vector<1x128xf32> to vector<8x128xf32>
    %6 = arith.addf %4, %5 : vector<8x128xf32>
    %c0_5 = arith.constant 0 : index
    %c0_6 = arith.constant 0 : index
    %7 = vector.load %arg4[%c0_5, %c0_6] : memref<1x128xf32, #tpu.memory_space<vmem>>, vector<1x128xf32>
    %cst_7 = arith.constant 0.000000e+00 : f32
    %8 = vector.broadcast %cst_7 : f32 to vector<8x128xf32>
    %9 = arith.cmpf ogt, %6, %8 : vector<8x128xf32>
    %10 = vector.broadcast %7 : vector<1x128xf32> to vector<8x128xf32>
    %11 = arith.mulf %10, %6 : vector<8x128xf32>
    %12 = arith.select %9, %6, %11 : vector<8x128xi1>, vector<8x128xf32>
    %c0_8 = arith.constant 0 : index
    %c0_9 = arith.constant 0 : index
    %13 = vector.load %arg5[%c0_8, %c0_9] : memref<128x128xbf16, #tpu.memory_space<vmem>>, vector<128x128xbf16>
    %c0_10 = arith.constant 0 : index
    %c0_11 = arith.constant 0 : index
    %14 = vector.load %arg6[%c0_10, %c0_11] : memref<1x128xf32, #tpu.memory_space<vmem>>, vector<1x128xf32>
    %15 = arith.truncf %12 : vector<8x128xf32> to vector<8x128xbf16>
    %cst_12 = arith.constant dense<0.000000e+00> : vector<8x128xf32>
    %16 = tpu.matmul %15, %13, %cst_12 {dimension_numbers = #tpu.dot_dimension_numbers<[1], [0], [0], [1], [0, 0, 1, 1], [], []>} : vector<8x128xbf16>, vector<128x128xbf16>, vector<8x128xf32> -> vector<8x128xf32>
    %17 = vector.broadcast %14 : vector<1x128xf32> to vector<8x128xf32>
    %18 = arith.addf %16, %17 : vector<8x128xf32>
    %c0_13 = arith.constant 0 : index
    %c0_14 = arith.constant 0 : index
    %19 = vector.load %arg7[%c0_13, %c0_14] : memref<1x128xf32, #tpu.memory_space<vmem>>, vector<1x128xf32>
    %cst_15 = arith.constant 0.000000e+00 : f32
    %20 = vector.broadcast %cst_15 : f32 to vector<8x128xf32>
    %21 = arith.cmpf ogt, %18, %20 : vector<8x128xf32>
    %22 = vector.broadcast %19 : vector<1x128xf32> to vector<8x128xf32>
    %23 = arith.mulf %22, %18 : vector<8x128xf32>
    %24 = arith.select %21, %18, %23 : vector<8x128xi1>, vector<8x128xf32>
    %c0_16 = arith.constant 0 : index
    %c0_17 = arith.constant 0 : index
    %25 = vector.load %arg8[%c0_16, %c0_17] : memref<128x128xbf16, #tpu.memory_space<vmem>>, vector<128x128xbf16>
    %c0_18 = arith.constant 0 : index
    %c0_19 = arith.constant 0 : index
    %26 = vector.load %arg9[%c0_18, %c0_19] : memref<1x128xf32, #tpu.memory_space<vmem>>, vector<1x128xf32>
    %27 = arith.truncf %24 : vector<8x128xf32> to vector<8x128xbf16>
    %cst_20 = arith.constant dense<0.000000e+00> : vector<8x128xf32>
    %28 = tpu.matmul %27, %25, %cst_20 {dimension_numbers = #tpu.dot_dimension_numbers<[1], [0], [0], [1], [0, 0, 1, 1], [], []>} : vector<8x128xbf16>, vector<128x128xbf16>, vector<8x128xf32> -> vector<8x128xf32>
    %29 = vector.broadcast %26 : vector<1x128xf32> to vector<8x128xf32>
    %30 = arith.addf %28, %29 : vector<8x128xf32>
    %31 = arith.negf %30 : vector<8x128xf32>
    %32 = math.exp %31 : vector<8x128xf32>
    %cst_21 = arith.constant 1.000000e+00 : f32
    %33 = vector.broadcast %cst_21 : f32 to vector<8x128xf32>
    %34 = arith.addf %33, %32 : vector<8x128xf32>
    %35 = arith.divf %33, %34 : vector<8x128xf32>
    %c0_22 = arith.constant 0 : index
    %c0_23 = arith.constant 0 : index
    %36 = vector.load %arg10[%c0_22, %c0_23] : memref<8x128xf32, #tpu.memory_space<vmem>>, vector<8x128xf32>
    tpu.vector_store %arg10[%c0_22, %c0_23], %35 {strides = array<i32>} : memref<8x128xf32, #tpu.memory_space<vmem>>, vector<8x128xf32>,
    return
  }
  func.func @transform_0(%arg0: i32) -> (i32, i32) {
    %c0_i32 = arith.constant 0 : i32
    %c0_i32_0 = arith.constant 0 : i32
    return %arg0, %c0_i32 : i32, i32
  }
  func.func @transform_1(%arg0: i32) -> (i32, i32) {
    %c0_i32 = arith.constant 0 : i32
    %c0_i32_0 = arith.constant 0 : i32
    %c0_i32_1 = arith.constant 0 : i32
    return %c0_i32, %c0_i32_0 : i32, i32
  }
  func.func @transform_2(%arg0: i32) -> (i32, i32) {
    %c0_i32 = arith.constant 0 : i32
    %c0_i32_0 = arith.constant 0 : i32
    %c0_i32_1 = arith.constant 0 : i32
    return %c0_i32, %c0_i32_0 : i32, i32
  }
  func.func @transform_3(%arg0: i32) -> (i32, i32) {
    %c0_i32 = arith.constant 0 : i32
    %c0_i32_0 = arith.constant 0 : i32
    %c0_i32_1 = arith.constant 0 : i32
    return %c0_i32, %c0_i32_0 : i32, i32
  }
  func.func @transform_4(%arg0: i32) -> (i32, i32) {
    %c0_i32 = arith.constant 0 : i32
    %c0_i32_0 = arith.constant 0 : i32
    %c0_i32_1 = arith.constant 0 : i32
    return %c0_i32, %c0_i32_0 : i32, i32
  }
  func.func @transform_5(%arg0: i32) -> (i32, i32) {
    %c0_i32 = arith.constant 0 : i32
    %c0_i32_0 = arith.constant 0 : i32
    %c0_i32_1 = arith.constant 0 : i32
    return %c0_i32, %c0_i32_0 : i32, i32
  }
  func.func @transform_6(%arg0: i32) -> (i32, i32) {
    %c0_i32 = arith.constant 0 : i32
    %c0_i32_0 = arith.constant 0 : i32
    %c0_i32_1 = arith.constant 0 : i32
    return %c0_i32, %c0_i32_0 : i32, i32
  }
  func.func @transform_7(%arg0: i32) -> (i32, i32) {
    %c0_i32 = arith.constant 0 : i32
    %c0_i32_0 = arith.constant 0 : i32
    %c0_i32_1 = arith.constant 0 : i32
    return %c0_i32, %c0_i32_0 : i32, i32
  }
  func.func @transform_8(%arg0: i32) -> (i32, i32) {
    %c0_i32 = arith.constant 0 : i32
    %c0_i32_0 = arith.constant 0 : i32
    %c0_i32_1 = arith.constant 0 : i32
    return %c0_i32, %c0_i32_0 : i32, i32
  }
  func.func @transform_9(%arg0: i32) -> (i32, i32) {
    %c0_i32 = arith.constant 0 : i32
    %c0_i32_0 = arith.constant 0 : i32
    return %arg0, %c0_i32 : i32, i32
  }
}

</mosaic_0001>

<bundles_post_ra>
// kernel: tpu_custom_call.1
= control target key start
LH: loop header
LB: loop body
LE: loop exit
PB: predicated region body
PF: predicated region fallthrough
CT: control target
= control target key end

     0   :  { %14 = vsyncpa [#allocation3], 0  ;;  %s913_s0 = inlined_call_operand.hbm [shape: f32[8,128], index: 0, kind: input, shape index: {}]   ;;  %s914_s1 = inlined_call_operand.hbm [shape: bf16[128,128], index: 1, kind: input, shape index: {}]   ;;  %s915_s2 = inlined_call_operand.vmem [shape: f32[1,128], index: 2, kind: input, shape index: {}]   ;;  %s916_s3 = inlined_call_operand.vmem [shape: f32[1,128], index: 3, kind: input, shape index: {}]   ;;  %s917_s4 = inlined_call_operand.hbm [shape: bf16[128,128], index: 4, kind: input, shape index: {}]   ;;  %s918_s5 = inlined_call_operand.vmem [shape: f32[1,128], index: 5, kind: input, shape index: {}]   ;;  %s919_s6 = inlined_call_operand.vmem [shape: f32[1,128], index: 6, kind: input, shape index: {}]   ;;  %s920_s7 = inlined_call_operand.hbm [shape: bf16[128,128], index: 7, kind: input, shape index: {}]   ;;  %s921_s8 = inlined_call_operand.vmem [shape: f32[1,128], index: 8, kind: input, shape index: {}]   ;;  %s922_s9 = inlined_call_operand.hbm [shape: f32[8,128], index: 9, kind: output, shape index: {}]  }
   0x1   :  { %15 = vsyncpa [#allocation6], 0 }
   0x2   :  { %16 = vsyncpa [#allocation9], 0 }
   0x3   :  { %17 = vsyncpa [#allocation4], 0  ;;  %s740_s30 = smov [#allocation5]   ;;  %s622_s13 = scalar_lea.hbm %s914_s1, 1024 }
   0x4   :  { %s33_s10 = sshll.u32 %s740_s30, 4  ;;  %p623_p0 = scmp.ne.s32.totalorder %s914_s1, %s622_s13  ;;  %s34_s10 = int_to_ptr.vmem [resolvable:$true] %s33_s10 }
   0x5   :  { %p626_p1 = scmp.lt.u32.totalorder %s622_s13, %s914_s1 }
   0x7   :  { %p628_p2 = pnand %p626_p1, %p623_p0 }
   0x9   :  { %631 = shalt.err (!%p628_p2)
}
   0xa   :  { %s632_s18 = scalar_lea.vmem %s34_s10, 1024  ;;  %p637_p4 = scmp.lt.s32.totalorder %s34_s10, %s34_s10 }
   0xb   :  { %p633_p3 = scmp.ne.s32.totalorder %s34_s10, %s632_s18  ;;  %p638_p5 = scmp.lt.s32.totalorder %s632_s18, %s632_s18 }
   0xd   :  { %p639_p6 = por %p638_p5, %p637_p4 }
   0xf   :  { %p640_p7 = pnand %p639_p6, %p633_p3 }
  0x11   :  { %643 = shalt.err (!%p640_p7)
}
  0x12   :  { %s741_s19 = smov 64   ;;  %s742_s20 = smov 4  }
  0x13   :  { %39 = dma.hbm_to_vmem [thread:$0]  %s914_s1, 1024, %s34_s10, [#allocation6], %s741_s19, %s741_s19, %s742_s20  }
  0x14   :  { %s743_s23 = smov [#allocation2]   ;;  %s744_s25 = smov [#allocation7]  }
  0x15   :  { %s24_s24 = sshll.u32 %s743_s23, 4  ;;  %s49_s26 = sshll.u32 %s744_s25, 4  ;;  %s25_s24 = int_to_ptr.vmem [resolvable:$true] %s24_s24  ;;  %s50_s26 = int_to_ptr.vmem [resolvable:$true] %s49_s26 }
  0x16   :  { %s644_s29 = scalar_lea.hbm %s913_s0, 128 }
  0x17   :  { %p645_p8 = scmp.ne.s32.totalorder %s913_s0, %s644_s29  ;;  %p648_p9 = scmp.lt.u32.totalorder %s644_s29, %s913_s0 }
  0x19   :  { %p650_p10 = pnand %p648_p9, %p645_p8 }
  0x1b   :  { %653 = shalt.err (!%p650_p10)
}
  0x1c   :  { %s654_s1 = scalar_lea.vmem %s25_s24, 128  ;;  %p659_p12 = scmp.lt.s32.totalorder %s25_s24, %s25_s24 }
  0x1d   :  { %p655_p11 = scmp.ne.s32.totalorder %s25_s24, %s654_s1  ;;  %p660_p13 = scmp.lt.s32.totalorder %s654_s1, %s654_s1 }
  0x1f   :  { %p661_p0 = por %p660_p13, %p659_p12 }
  0x21   :  { %p662_p1 = pnand %p661_p0, %p655_p11 }
  0x23   :  { %665 = shalt.err (!%p662_p1)
}
  0x24   :  { %27 = dma.hbm_to_vmem [thread:$0]  %s913_s0, 128, %s25_s24, [#allocation3]  }
  0x25   :  { %s666_s17 = scalar_lea.hbm %s917_s4, 1024 }
  0x26   :  { %p667_p2 = scmp.ne.s32.totalorder %s917_s4, %s666_s17  ;;  %p670_p3 = scmp.lt.u32.totalorder %s666_s17, %s917_s4 }
  0x28   :  { %p672_p4 = pnand %p670_p3, %p667_p2 }
  0x2a   :  { %675 = shalt.err (!%p672_p4)
}
  0x2b   :  { %s676_s25 = scalar_lea.vmem %s50_s26, 1024  ;;  %p681_p6 = scmp.lt.s32.totalorder %s50_s26, %s50_s26 }
  0x2c   :  { %p677_p5 = scmp.ne.s32.totalorder %s50_s26, %s676_s25  ;;  %p682_p7 = scmp.lt.s32.totalorder %s676_s25, %s676_s25 }
  0x2e   :  { %p683_p8 = por %p682_p7, %p681_p6 }
  0x30   :  { %p684_p9 = pnand %p683_p8, %p677_p5 }
  0x32   :  { %687 = shalt.err (!%p684_p9)
}
  0x33   :  { %55 = dma.hbm_to_vmem [thread:$0]  %s917_s4, 1024, %s50_s26, [#allocation6], %s741_s19, %s741_s19, %s742_s20  }
  0x34   :  { %s745_s27 = smov [#allocation8]   ;;  %s688_s11 = scalar_lea.hbm %s920_s7, 1024 }
  0x35   :  { %s65_s28 = sshll.u32 %s745_s27, 4  ;;  %p689_p10 = scmp.ne.s32.totalorder %s920_s7, %s688_s11  ;;  %s66_s28 = int_to_ptr.vmem [resolvable:$true] %s65_s28 }
  0x36   :  { %p692_p11 = scmp.lt.u32.totalorder %s688_s11, %s920_s7 }
  0x38   :  { %p694_p12 = pnand %p692_p11, %p689_p10 }
  0x3a   :  { %697 = shalt.err (!%p694_p12)
}
  0x3b   :  { %s698_s14 = scalar_lea.vmem %s66_s28, 1024  ;;  %p703_p0 = scmp.lt.s32.totalorder %s66_s28, %s66_s28 }
  0x3c   :  { %p699_p13 = scmp.ne.s32.totalorder %s66_s28, %s698_s14  ;;  %p704_p1 = scmp.lt.s32.totalorder %s698_s14, %s698_s14 }
  0x3e   :  { %p705_p2 = por %p704_p1, %p703_p0 }
  0x40   :  { %p706_p3 = pnand %p705_p2, %p699_p13 }
  0x42   :  { %709 = shalt.err (!%p706_p3)
}
  0x43   :  { %71 = dma.hbm_to_vmem [thread:$0]  %s920_s7, 1024, %s66_s28, [#allocation9], %s741_s19, %s741_s19, %s742_s20  }
  0x44   :  { %732 = dma.done.wait [#allocation3], 128  }
  0x45   :  { %733 = vsyncadd [#allocation3], 4294967168 }
  0x46   :  { %734 = dma.done.wait [#allocation6], 2048  }
  0x47   :  { %735 = vsyncadd [#allocation6], 4294965248 }
  0x48   :  { %736 = dma.done.wait [#allocation9], 1024  }
  0x49   :  { %737 = vsyncadd [#allocation9], 4294966272  ;;  %v746_v0 = vmov 0.0   ;;  %vm747_vm0 = vmmov 0   ;;  %v594_v1 = vld [vmem:[#allocation5] sm:$0xff]   ;;  %v595_v2 = vld [vmem:[#allocation5 + $0x8] sm:$0xff]  }
  0x4a   :  { %525 = vmatprep.subr.bf16.mxu0 %v746_v0  ;;  %541 = vmatprep.mubr.msk.bf16.mxu0 %vm747_vm0, %v746_v0  ;;  %v596_v3 = vld [vmem:[#allocation5 + $0x10] sm:$0xff]   ;;  %v602_v4 = vld [vmem:[#allocation7] sm:$0xff]   ;;  %v597_v5 = vld [vmem:[#allocation5 + $0x18] sm:$0xff]  }
  0x4b   :  { %545 = vmatprep.subr.bf16.mxu1 %v746_v0  ;;  %561 = vmatprep.mubr.msk.bf16.mxu1 %vm747_vm0, %v746_v0  ;;  %v603_v6 = vld [vmem:[#allocation7 + $0x8] sm:$0xff]   ;;  %v598_v7 = vld [vmem:[#allocation5 + $0x20] sm:$0xff]   ;;  %v604_v8 = vld [vmem:[#allocation7 + $0x10] sm:$0xff]  }
  0x4c   :  { %526 = vmatpush3.bf16.msra.mxu0 %v594_v1  ;;  %546 = vmatpush3.bf16.msra.mxu1 %v602_v4  ;;  %v599_v9 = vld [vmem:[#allocation5 + $0x28] sm:$0xff]   ;;  %v605_v10 = vld [vmem:[#allocation7 + $0x18] sm:$0xff]   ;;  %v600_v11 = vld [vmem:[#allocation5 + $0x30] sm:$0xff]  }
  0x4d   :  { %527 = vmatprep.subr.bf16.mxu0 %v746_v0  ;;  %547 = vmatprep.subr.bf16.mxu1 %v746_v0  ;;  %v606_v12 = vld [vmem:[#allocation7 + $0x20] sm:$0xff]   ;;  %v601_v13 = vld [vmem:[#allocation5 + $0x38] sm:$0xff]   ;;  %v607_v15 = vld [vmem:[#allocation7 + $0x28] sm:$0xff]  }
  0x4e   :  { %v87_v14 = vld [vmem:[#allocation2] sm:$0xff]  ;;  %v608_v17 = vld [vmem:[#allocation7 + $0x30] sm:$0xff]   ;;  %v610_v19 = vld [vmem:[#allocation8] sm:$0xff]  }
  0x4f   :  { %v105_v16 = vpack.c.bf16 %v87_v14, %v87_v14  ;;  %v609_v18 = vld [vmem:[#allocation7 + $0x38] sm:$0xff]   ;;  %v611_v20 = vld [vmem:[#allocation8 + $0x8] sm:$0xff]   ;;  %v612_v21 = vld [vmem:[#allocation8 + $0x10] sm:$0xff]  }
  0x50   :  { %528 = vmatpush3.bf16.msra.mxu0 %v595_v2  ;;  %548 = vmatpush3.bf16.msra.mxu1 %v603_v6  ;;  %v613_v22 = vld [vmem:[#allocation8 + $0x18] sm:$0xff]   ;;  %v614_v23 = vld [vmem:[#allocation8 + $0x20] sm:$0xff]   ;;  %v615_v24 = vld [vmem:[#allocation8 + $0x28] sm:$0xff]  }
  0x51   :  { %529 = vmatprep.subr.bf16.mxu0 %v746_v0  ;;  %549 = vmatprep.subr.bf16.mxu1 %v746_v0  ;;  %v468_v25 = vld [vmem:[%s915_s2] ss:$0 sm:$0xff]  ;;  %v616_v35 = vld [vmem:[#allocation8 + $0x30] sm:$0xff]  }
  0x52   :  { %v477_v27 = vld [vmem:[%s916_s3] ss:$0 sm:$0xff] }
  0x53   :  { %v617_v36 = vld [vmem:[#allocation8 + $0x38] sm:$0xff]  }
  0x54   :  { %530 = vmatpush3.bf16.msra.mxu0 %v596_v3  ;;  %550 = vmatpush3.bf16.msra.mxu1 %v604_v8  ;;  %v478_v37 = vld [vmem:[%s918_s5] ss:$0 sm:$0xff]  ;;  %s748_s5 = smov [#allocation10]  }
  0x55   :  { %531 = vmatprep.subr.bf16.mxu0 %v746_v0  ;;  %551 = vmatprep.subr.bf16.mxu1 %v746_v0  ;;  %v487_v39 = vld [vmem:[%s919_s6] ss:$0 sm:$0xff]  ;;  %s457_s6 = sshll.u32 %s748_s5, 4  ;;  %s458_s6 = int_to_ptr.vmem [resolvable:$true] %s457_s6 }
  0x56   :  { %v488_v47 = vld [vmem:[%s921_s8] ss:$0 sm:$0xff]  ;;  %s710_s22 = scalar_lea.vmem %s458_s6, 128  ;;  %p715_p5 = scmp.lt.s32.totalorder %s458_s6, %s458_s6 }
  0x57   :  { %p711_p4 = scmp.ne.s32.totalorder %s458_s6, %s710_s22  ;;  %p716_p6 = scmp.lt.s32.totalorder %s710_s22, %s710_s22 }
  0x58   :  { %532 = vmatpush3.bf16.msra.mxu0 %v597_v5  ;;  %552 = vmatpush3.bf16.msra.mxu1 %v605_v10 }
  0x59   :  { %533 = vmatprep.subr.bf16.mxu0 %v746_v0  ;;  %553 = vmatprep.subr.bf16.mxu1 %v746_v0  ;;  %p717_p7 = por %p716_p6, %p715_p5 }
  0x5b   :  { %p718_p8 = pnand %p717_p7, %p711_p4 }
  0x5c   :  { %534 = vmatpush3.bf16.msra.mxu0 %v598_v7  ;;  %554 = vmatpush3.bf16.msra.mxu1 %v606_v12 }
  0x5d   :  { %535 = vmatprep.subr.bf16.mxu0 %v746_v0  ;;  %555 = vmatprep.subr.bf16.mxu1 %v746_v0 }
  0x60   :  { %536 = vmatpush3.bf16.msra.mxu0 %v599_v9  ;;  %556 = vmatpush3.bf16.msra.mxu1 %v607_v15 }
  0x61   :  { %537 = vmatprep.subr.bf16.mxu0 %v746_v0  ;;  %557 = vmatprep.subr.bf16.mxu1 %v746_v0 }
  0x64   :  { %538 = vmatpush3.bf16.msra.mxu0 %v600_v11  ;;  %558 = vmatpush3.bf16.msra.mxu1 %v608_v17 }
  0x65   :  { %539 = vmatprep.subr.bf16.mxu0 %v746_v0  ;;  %559 = vmatprep.subr.bf16.mxu1 %v746_v0 }
  0x68   :  { %540 = vmatpush3.bf16.msra.mxu0 %v601_v13  ;;  %560 = vmatpush3.bf16.msra.mxu1 %v609_v18 }
  0x69   :  { %565 = vmatprep.subr.bf16.mxu0 %v746_v0 }
  0x6b   :  { %542 = vmatmul.mubr.bf16.vlgmr.msra.gmra.mrb[0].mxu0 %v105_v16 }
  0x6c   :  { %581 = vmatprep.mubr.msk.bf16.mxu0 %vm747_vm0, %v746_v0  ;;  %566 = vmatpush3.bf16.msra.mxu0 %v610_v19 }
  0x6d   :  { %567 = vmatprep.subr.bf16.mxu0 %v746_v0 }
  0x70   :  { %568 = vmatpush3.bf16.msra.mxu0 %v611_v20 }
  0x71   :  { %569 = vmatprep.subr.bf16.mxu0 %v746_v0 }
  0x74   :  { %570 = vmatpush3.bf16.msra.mxu0 %v612_v21 }
  0x75   :  { %571 = vmatprep.subr.bf16.mxu0 %v746_v0 }
  0x78   :  { %572 = vmatpush3.bf16.msra.mxu0 %v613_v22 }
  0x79   :  { %573 = vmatprep.subr.bf16.mxu0 %v746_v0 }
  0x7c   :  { %574 = vmatpush3.bf16.msra.mxu0 %v614_v23 }
  0x7d   :  { %575 = vmatprep.subr.bf16.mxu0 %v746_v0 }
  0x80   :  { %576 = vmatpush3.bf16.msra.mxu0 %v615_v24 }
  0x81   :  { %577 = vmatprep.subr.bf16.mxu0 %v746_v0 }
  0x84   :  { %578 = vmatpush3.bf16.msra.mxu0 %v616_v35 }
  0x85   :  { %579 = vmatprep.subr.bf16.mxu0 %v746_v0 }
  0x88   :  { %580 = vmatpush3.bf16.msra.mxu0 %v617_v36 }
 0x13e   :  { %v194_v26 = vpop.f32.mrb[0].mxu0 }
 0x13f   :  { %v195_v28 = vadd.f32 %v468_v25, %v194_v26  ;;  %v543_v29 = vpop.f32.mrb[1].mxu0 }
 0x140   :  { %v197_v30 = vpop.f32.mrb[2].mxu0 }
 0x141   :  { %vm201_vm1 = vcmp.gt.f32.partialorder %v195_v28, 0.0  ;;  %v208_v31 = vmul.f32 %v477_v27, %v195_v28  ;;  %v544_v32 = vpop.f32.mrb[3].mxu0 }
 0x143   :  { %v209_v33 = vsel %vm201_vm1, %v195_v28, %v208_v31 }
 0x144   :  { %v227_v34 = vpack.c.bf16 %v209_v33, %v209_v33 }
 0x146   :  { %562 = vmatmul.mubr.bf16.vlgmr.msra.gmra.mrb[0].mxu1 %v227_v34 }
 0x219   :  { %v316_v38 = vpop.f32.mrb[0].mxu1 }
 0x21a   :  { %v317_v40 = vadd.f32 %v478_v37, %v316_v38  ;;  %v563_v41 = vpop.f32.mrb[1].mxu1 }
 0x21b   :  { %v319_v42 = vpop.f32.mrb[2].mxu1 }
 0x21c   :  { %vm323_vm2 = vcmp.gt.f32.partialorder %v317_v40, 0.0  ;;  %v330_v43 = vmul.f32 %v487_v39, %v317_v40  ;;  %v564_v44 = vpop.f32.mrb[3].mxu1 }
 0x21e   :  { %v331_v45 = vsel %vm323_vm2, %v317_v40, %v330_v43 }
 0x21f   :  { %v349_v46 = vpack.c.bf16 %v331_v45, %v331_v45 }
 0x221   :  { %582 = vmatmul.mubr.bf16.vlgmr.msra.gmra.mrb[4].mxu0 %v349_v46 }
 0x2f4   :  { %v438_v48 = vpop.f32.mrb[4].mxu0 }
 0x2f5   :  { %v439_v49 = vadd.f32 %v488_v47, %v438_v48  ;;  %v583_v50 = vpop.f32.mrb[5].mxu0 }
 0x2f6   :  { %v441_v51 = vpop.f32.mrb[6].mxu0 }
 0x2f7   :  { %v497_v52 = vmul.f32 -1.442695, %v439_v49  ;;  %v584_v53 = vpop.f32.mrb[7].mxu0 }
 0x2f9   :  { %618 = vpow2.f32 %v497_v52 }
 0x303   :  { %v619_v54 = vpop.eup %618 }
 0x304   :  { %v447_v55 = vadd.f32 1.0, %v619_v54 }
 0x306   :  { %620 = vrcp.f32 %v447_v55 }
 0x310   :  { %v621_v56 = vpop.eup %620 }
 0x311   :  { %450 = vst [vmem:[#allocation10] sm:$0xff] %v621_v56 }
 0x312   :  { %721 = shalt.err (!%p718_p8)
}
 0x313   :  { %s722_s25 = scalar_lea.hbm %s922_s9, 128 }
 0x314   :  { %p723_p9 = scmp.ne.s32.totalorder %s922_s9, %s722_s25  ;;  %p726_p10 = scmp.lt.u32.totalorder %s722_s25, %s922_s9 }
 0x316   :  { %p728_p11 = pnand %p726_p10, %p723_p9 }
 0x318   :  { %731 = shalt.err (!%p728_p11)
}
 0x319   :  { %460 = dma.vmem_to_hbm [thread:$0]  %s458_s6, 128, %s922_s9, [#allocation4]  }
 0x31a   :  { %738 = dma.done.wait [#allocation4], 128  }
 0x31b   :  { %739 = vsyncadd [#allocation4], 4294967168 }
 0x31c   :  { %464 = vsyncpa [#allocation3], 1 }
 0x31d   :  { %465 = vsyncpa [#allocation6], 1 }
 0x31e   :  { %466 = vsyncpa [#allocation9], 1 }
 0x31f   :  { %467 = vsyncpa [#allocation4], 1 }

</bundles_post_ra>
